<compile_context>
chip_gen: v7x
topology: tpu7x:2x2x1
jax: 0.10.0
libtpu: 0.0.40
codegen_flags: <defaults>
</compile_context>

<pallas_src>
import functools
import math

import jax
import jax.numpy as jnp
from jax.experimental import pallas as pl
from jax.experimental.pallas import tpu as pltpu


_LANE = 128
_SUBLANE = 8


def _round_up(x, m):
    return (x + m - 1) // m * m


@functools.lru_cache(maxsize=None)
def _vmem_budgets():
    """(tile_budget_bytes, scoped_vmem_limit_bytes), generation-aware.
    v5e/v6e have 128 MiB VMEM per TensorCore, v7x has 64 MiB."""
    try:
        cap = int(pltpu.get_tpu_info().vmem_capacity_bytes)
    except Exception:
        cap = 64 * 1024 * 1024  # conservative fallback (v7x-sized)
    limit = max(32 * 1024 * 1024, min(cap - 16 * 1024 * 1024, int(cap * 0.8)))
    return int(limit * 0.75), int(limit)


def _choose_tm(m_rows, per_row_bytes, resident_bytes, tile_budget):
    """Largest M-tile (multiple of 8, starting at 4096) such that double-buffered per-row tiles
    plus the (double-buffered) resident weight/bias fit the VMEM tile budget.  Guarantees at
    least 2 grid steps on the parallel M axis (v7x has 2 TensorCores) when m_rows allows."""
    tm = 4096
    while tm > _SUBLANE and 2 * tm * per_row_bytes + resident_bytes > tile_budget:
        tm //= 2
    tm = max(tm, _SUBLANE)
    m_pad8 = _round_up(max(m_rows, 1), _SUBLANE)
    if tm >= m_pad8:
        if m_rows > _SUBLANE:
            tm = _round_up(-(-m_rows // 2), _SUBLANE)   # 2 tiles -> both TCs busy on v7x
        else:
            tm = m_pad8
    return tm


# ----------------------------------------------------------------------------------------------
# Tiled GEMM (+ bias, optional fused ReLU), weight resident in VMEM across the M grid axis.
# ----------------------------------------------------------------------------------------------
def _gemm_bias_kernel(x_ref, w_ref, b_ref, o_ref):
    acc = jnp.dot(x_ref[...], w_ref[...], preferred_element_type=jnp.float32)
    o_ref[...] = (acc + b_ref[...]).astype(o_ref.dtype)


def _gemm_bias_relu_kernel(x_ref, w_ref, b_ref, o_ref):
    acc = jnp.dot(x_ref[...], w_ref[...], preferred_element_type=jnp.float32)
    o_ref[...] = jnp.maximum(acc + b_ref[...], 0.0).astype(o_ref.dtype)


def _tiled_gemm_bias(x2d, w, b=None, *, relu=False):
    """y = x2d @ w (+ b) [+ ReLU].  x2d: (M, K), w: (K, N), b: (N,) or None."""
    M, K = x2d.shape
    K2, N = w.shape
    assert K == K2
    out_dtype = x2d.dtype
    itemsize = jnp.dtype(out_dtype).itemsize
    tile_budget, vmem_limit = _vmem_budgets()

    Kp = _round_up(K, _LANE)
    Np = _round_up(N, _LANE)
    per_row = (Kp + Np) * itemsize
    resident = 2 * Kp * Np * itemsize + 2 * 4 * Np      # double-buffered weight + f32 bias
    TM = _choose_tm(M, per_row, resident, tile_budget)
    Mp = _round_up(M, TM)
    # TODO(synk): for very large K (>= ~8k f32) add a K grid axis + f32 accumulator scratch.

    x_p = jnp.pad(x2d, ((0, Mp - M), (0, Kp - K)))
    w_p = jnp.pad(w, ((0, Kp - K), (0, Np - N)))
    b_row = (jnp.zeros((1, Np), jnp.float32) if b is None
             else jnp.pad(b.astype(jnp.float32).reshape(1, N), ((0, 0), (0, Np - N))))

    kernel = _gemm_bias_relu_kernel if relu else _gemm_bias_kernel
    out = pl.pallas_call(
        kernel,
        out_shape=jax.ShapeDtypeStruct((Mp, Np), out_dtype),
        grid_spec=pl.GridSpec(
            grid=(Mp // TM,),
            in_specs=[
                pl.BlockSpec((TM, Kp), lambda i: (i, 0)),
                pl.BlockSpec((Kp, Np), lambda i: (0, 0)),   # weight resident across M tiles
                pl.BlockSpec((1, Np), lambda i: (0, 0)),    # bias resident
            ],
            out_specs=pl.BlockSpec((TM, Np), lambda i: (i, 0)),
        ),
        compiler_params=pltpu.CompilerParams(
            dimension_semantics=("parallel",),
            vmem_limit_bytes=vmem_limit,
        ),
        cost_estimate=pl.CostEstimate(
            flops=int(2 * Mp * Kp * Np),
            transcendentals=0,
            bytes_accessed=int(itemsize * (Mp * Kp + Kp * Np + Mp * Np) + 4 * Np),
        ),
    )(x_p, w_p, b_row)
    return out[:M, :N]


# ----------------------------------------------------------------------------------------------
# GEMM + bias + residual add + PyTorch-style LayerNorm fused into one kernel epilogue.
# ----------------------------------------------------------------------------------------------
def _gemm_bias_res_ln_kernel(x_ref, w_ref, b_ref, r_ref, g_ref, bta_ref, o_ref, *, eps, n_feat):
    acc = jnp.dot(x_ref[...], w_ref[...], preferred_element_type=jnp.float32)
    z = acc + b_ref[...] + r_ref[...].astype(jnp.float32)
    mean = jnp.mean(z, axis=-1, keepdims=True)
    diff = z - mean
    var = jnp.sum(diff * diff, axis=-1, keepdims=True) * (1.0 / (n_feat - 1))   # unbiased (ddof=1)
    inv = pl.reciprocal(jnp.sqrt(var) + eps)    # EUP reciprocal (approx=True is a perf drop-in)
    o_ref[...] = (g_ref[...] * diff * inv + bta_ref[...]).astype(o_ref.dtype)


def _tiled_gemm_bias_res_ln(x2d, w, b, res2d, gamma, beta, eps):
    """LayerNorm(x2d @ w + b + res2d) with PyTorch-style LN (unbiased std, eps added to std)."""
    M, K = x2d.shape
    K2, N = w.shape
    assert K == K2 and res2d.shape == (M, N)
    out_dtype = x2d.dtype
    itemsize = jnp.dtype(out_dtype).itemsize
    tile_budget, vmem_limit = _vmem_budgets()

    Kp = _round_up(K, _LANE)      # N stays un-padded: LN statistics must cover exactly N features
    per_row = (Kp + 3 * N) * itemsize
    resident = 2 * Kp * N * itemsize + 6 * 4 * N
    TM = _choose_tm(M, per_row, resident, tile_budget)
    Mp = _round_up(M, TM)

    x_p = jnp.pad(x2d, ((0, Mp - M), (0, Kp - K)))
    r_p = jnp.pad(res2d, ((0, Mp - M), (0, 0)))
    w_p = jnp.pad(w, ((0, Kp - K), (0, 0)))
    b_row = b.astype(jnp.float32).reshape(1, N)
    g_row = gamma.astype(jnp.float32).reshape(1, N)
    bt_row = beta.astype(jnp.float32).reshape(1, N)

    out = pl.pallas_call(
        functools.partial(_gemm_bias_res_ln_kernel, eps=eps, n_feat=N),
        out_shape=jax.ShapeDtypeStruct((Mp, N), out_dtype),
        grid_spec=pl.GridSpec(
            grid=(Mp // TM,),
            in_specs=[
                pl.BlockSpec((TM, Kp), lambda i: (i, 0)),
                pl.BlockSpec((Kp, N), lambda i: (0, 0)),    # weight resident
                pl.BlockSpec((1, N), lambda i: (0, 0)),     # bias resident
                pl.BlockSpec((TM, N), lambda i: (i, 0)),    # residual tile
                pl.BlockSpec((1, N), lambda i: (0, 0)),     # LN gamma
                pl.BlockSpec((1, N), lambda i: (0, 0)),     # LN beta
            ],
            out_specs=pl.BlockSpec((TM, N), lambda i: (i, 0)),
        ),
        compiler_params=pltpu.CompilerParams(
            dimension_semantics=("parallel",),
            vmem_limit_bytes=vmem_limit,
        ),
        cost_estimate=pl.CostEstimate(
            flops=int(2 * Mp * Kp * N + 10 * Mp * N),
            transcendentals=int(Mp),
            bytes_accessed=int(itemsize * (Mp * Kp + Kp * N + 2 * Mp * N) + 3 * 4 * N),
        ),
    )(x_p, w_p, b_row, r_p, g_row, bt_row)
    return out[:M]


# ----------------------------------------------------------------------------------------------
# QKV projection: one GEMM, three lane-dense outputs (no XLA chunk/slice round trips).
# ----------------------------------------------------------------------------------------------
def _qkv_kernel(x_ref, w_ref, q_ref, k_ref, v_ref):
    acc = jnp.dot(x_ref[...], w_ref[...], preferred_element_type=jnp.float32)
    d = q_ref.shape[1]
    q_ref[...] = acc[:, :d].astype(q_ref.dtype)
    k_ref[...] = acc[:, d:2 * d].astype(k_ref.dtype)
    v_ref[...] = acc[:, 2 * d:3 * d].astype(v_ref.dtype)


def _qkv_projection(x2d, w_qkv):
    M, K = x2d.shape
    K2, N3 = w_qkv.shape
    assert K == K2 and N3 % 3 == 0
    D = N3 // 3
    itemsize = jnp.dtype(x2d.dtype).itemsize
    tile_budget, vmem_limit = _vmem_budgets()

    Kp = _round_up(K, _LANE)
    N3p = _round_up(N3, _LANE)
    per_row = (Kp + 3 * D) * itemsize
    resident = 2 * Kp * N3p * itemsize
    TM = _choose_tm(M, per_row, resident, tile_budget)
    Mp = _round_up(M, TM)

    x_p = jnp.pad(x2d, ((0, Mp - M), (0, Kp - K)))
    w_p = jnp.pad(w_qkv, ((0, Kp - K), (0, N3p - N3)))

    q, k, v = pl.pallas_call(
        _qkv_kernel,
        out_shape=tuple(jax.ShapeDtypeStruct((Mp, D), x2d.dtype) for _ in range(3)),
        grid_spec=pl.GridSpec(
            grid=(Mp // TM,),
            in_specs=[
                pl.BlockSpec((TM, Kp), lambda i: (i, 0)),
                pl.BlockSpec((Kp, N3p), lambda i: (0, 0)),   # weight resident across M tiles
            ],
            out_specs=tuple(pl.BlockSpec((TM, D), lambda i: (i, 0)) for _ in range(3)),
        ),
        compiler_params=pltpu.CompilerParams(
            dimension_semantics=("parallel",),
            vmem_limit_bytes=vmem_limit,
        ),
        cost_estimate=pl.CostEstimate(
            flops=int(2 * Mp * Kp * N3p),
            transcendentals=0,
            bytes_accessed=int(itemsize * (Mp * Kp + Kp * N3p + 3 * Mp * D)),
        ),
    )(x_p, w_p)
    return q[:M], k[:M], v[:M]


# ----------------------------------------------------------------------------------------------
# ConvCompress: Conv1d(D, D, ratio, stride=ratio, groups=heads) on NLC input, for K and V at once.
# stride == kernel_size  =>  non-overlapping-window GEMM with a block-diagonal (ratio*D, D) weight,
# so both the contraction and the stored output are lane-dense (full D instead of D/heads).
# ----------------------------------------------------------------------------------------------
def _conv_compress_kv(k, v, conv_w, conv_b, ratio, groups):
    B, Lp, D = k.shape
    assert Lp % ratio == 0 and D % groups == 0
    Lc = Lp // ratio
    Dg = D // groups

    xw = jnp.concatenate([k.reshape(B * Lc, ratio * D),
                          v.reshape(B * Lc, ratio * D)], axis=0)       # (2*B*Lc, ratio*D)

    # conv_w[g*Dg+ol, ci, kk]  ->  W_bd[kk*D + g*Dg + ci, g*Dg + ol], zero across groups.
    wg = jnp.transpose(conv_w.reshape(groups, Dg, Dg, ratio), (0, 3, 2, 1))   # (g, kk, ci, ol)
    wbd = jnp.einsum("gkio,gh->kgiho", wg, jnp.eye(groups, dtype=conv_w.dtype))
    wbd = wbd.reshape(ratio * D, D)
    # TODO(synk): for large heads/D pack several true per-group GEMMs per block instead of the
    # block-diagonal weight (which wastes a factor `groups` of MXU flops; this stage is mem-bound).

    out = _tiled_gemm_bias(xw, wbd, conv_b).reshape(2, B, Lc, D)
    return out[0], out[1]


# ----------------------------------------------------------------------------------------------
# Memory-compressed attention core: all heads of one batch per grid step, lane-dense (T, D) store.
# ----------------------------------------------------------------------------------------------
def _mca_attention_kernel(q_ref, k_ref, v_ref, bias_ref, o_ref, *, heads):
    q = q_ref[0].astype(jnp.float32)        # (T, D); Q already carries the d**-0.5 scale
    k = k_ref[0].astype(jnp.float32)        # (Lk, D)
    v = v_ref[0].astype(jnp.float32)
    bias = bias_ref[...]                    # (T, Lk) additive causal-compressed mask (0 / -1e30)
    dh = q.shape[-1] // heads
    outs = []
    for h in range(heads):                  # static unroll over heads
        lo = h * dh
        qh, kh, vh = q[:, lo:lo + dh], k[:, lo:lo + dh], v[:, lo:lo + dh]
        dots = jax.lax.dot_general(qh, kh, (((1,), (1,)), ((), ())),
                                   preferred_element_type=jnp.float32) + bias
        m = jnp.max(dots, axis=-1, keepdims=True)
        p = jnp.exp(dots - m)
        inv = pl.reciprocal(jnp.sum(p, axis=-1, keepdims=True))
        outs.append(jnp.dot(p * inv, vh, preferred_element_type=jnp.float32))
    o_ref[0] = jnp.concatenate(outs, axis=-1).astype(o_ref.dtype)    # lane-dense (T, D) store


def _mca_attention(q, k, v, bias2d, heads):
    B, T, D = q.shape
    Lk = k.shape[1]
    itemsize = jnp.dtype(q.dtype).itemsize
    _, vmem_limit = _vmem_budgets()
    # TODO(synk): for large T/Lk switch to a KV-block loop with online softmax (flash-style).
    return pl.pallas_call(
        functools.partial(_mca_attention_kernel, heads=heads),
        out_shape=jax.ShapeDtypeStruct((B, T, D), q.dtype),
        grid_spec=pl.GridSpec(
            grid=(B,),
            in_specs=[
                pl.BlockSpec((1, T, D), lambda b: (b, 0, 0)),
                pl.BlockSpec((1, Lk, D), lambda b: (b, 0, 0)),
                pl.BlockSpec((1, Lk, D), lambda b: (b, 0, 0)),
                pl.BlockSpec((T, Lk), lambda b: (0, 0)),     # mask bias resident across batches
            ],
            out_specs=pl.BlockSpec((1, T, D), lambda b: (b, 0, 0)),
        ),
        compiler_params=pltpu.CompilerParams(
            dimension_semantics=("parallel",),
            vmem_limit_bytes=vmem_limit,
        ),
        cost_estimate=pl.CostEstimate(
            flops=int(4 * B * T * Lk * D),
            transcendentals=int(B * heads * T * Lk),
            bytes_accessed=int(itemsize * (2 * B * T * D + 2 * B * Lk * D) + 4 * T * Lk),
        ),
    )(q, k, v, bias2d)


def _causal_compressed_mask_bias(t, cf, padding):
    """Additive (0 / -1e30) bias of shape (t, Lc+1): causal mask over compressed key blocks,
    with a never-masked null-key slot prepended (matches the PyTorch module)."""
    pos_q = jnp.arange(t)
    pos_k = jnp.arange(t)
    if padding < cf:
        pos_k = jnp.pad(pos_k, (padding, 0))
    blk_max = pos_k.reshape(-1, cf).max(axis=-1)
    mask = pos_q[:, None] < blk_max[None, :]
    mask = jnp.pad(mask, ((0, 0), (1, 0)), constant_values=False)
    return jnp.where(mask, jnp.float32(-1e30), jnp.float32(0.0))


def memory_compressed_attention(x, p, heads, cf):
    """MemoryCompressedAttention up to (but not including) to_out; causal=True, no input_mask,
    dropout = identity.  Returns the per-token concatenated head outputs, shape (B, T, D)."""
    B, T, D = x.shape
    assert D % heads == 0
    M = B * T
    scale = float(D) ** -0.5

    # Fold the d**-0.5 softmax scale into the Q columns of to_qkv (one tiny op on the weight).
    col_scale = jnp.concatenate([jnp.full((D,), scale, p["w_qkv"].dtype),
                                 jnp.ones((2 * D,), p["w_qkv"].dtype)])
    q2, k2, v2 = _qkv_projection(x.reshape(M, D), p["w_qkv"] * col_scale[None, :])
    q = q2.reshape(B, T, D)
    k = k2.reshape(B, T, D)
    v = v2.reshape(B, T, D)

    padding = cf - T % cf
    if padding < cf:
        k = jnp.pad(k, ((0, 0), (padding, 0), (0, 0)))
        v = jnp.pad(v, ((0, 0), (padding, 0), (0, 0)))
    if cf != 1:
        k, v = _conv_compress_kv(k, v, p["conv_w"], p["conv_b"], cf, heads)

    k = jnp.concatenate([jnp.broadcast_to(p["null_k"].astype(k.dtype), (B, 1, D)), k], axis=1)
    v = jnp.concatenate([jnp.broadcast_to(p["null_v"].astype(v.dtype), (B, 1, D)), v], axis=1)

    bias2d = _causal_compressed_mask_bias(T, cf, padding)
    return _mca_attention(q, k, v, bias2d, heads)


# ----------------------------------------------------------------------------------------------
# decoder_only_module.forward (inference: all Dropout layers are identity).
# ----------------------------------------------------------------------------------------------
def decoder_only_forward(x, params, heads, cf, eps=1e-6):
    B, T, D = x.shape
    M = B * T
    x2 = x.reshape(M, D)

    attn = memory_compressed_attention(x, params, heads, cf).reshape(M, D)
    # to_out GEMM fused with "+ x" residual and LayerNorm  ->  out2
    out2 = _tiled_gemm_bias_res_ln(attn, params["w_out"], params["b_out"],
                                   x2, params["ln_g"], params["ln_b"], eps)
    # FFN: w1 + ReLU, then w2 GEMM fused with "+ out2" residual and LayerNorm
    h = _tiled_gemm_bias(out2, params["ff_w1"], params["ff_b1"], relu=True)
    out = _tiled_gemm_bias_res_ln(h, params["ff_w2"], params["ff_b2"],
                                  out2, params["ln_g"], params["ln_b"], eps)
    return out.reshape(B, T, D)


# ----------------------------------------------------------------------------------------------
# Pure-JAX reference of the PyTorch forward (for the self-check).
# ----------------------------------------------------------------------------------------------
def _reference_forward(x, p, heads, cf, eps=1e-6):
    B, T, D = x.shape
    Dh = D // heads
    Dg = D // heads

    qkv = x @ p["w_qkv"]
    q, k, v = qkv[..., :D], qkv[..., D:2 * D], qkv[..., 2 * D:]
    padding = cf - T % cf
    if padding < cf:
        k = jnp.pad(k, ((0, 0), (padding, 0), (0, 0)))
        v = jnp.pad(v, ((0, 0), (padding, 0), (0, 0)))

    def grouped_conv(mem):
        Bm, Lp, _ = mem.shape
        Lc = Lp // cf
        win = mem.reshape(Bm, Lc, cf, heads, Dg)                 # b t k g c
        wr = p["conv_w"].reshape(heads, Dg, Dg, cf)              # g o c k
        return jnp.einsum("btkgc,gock->btgo", win, wr).reshape(Bm, Lc, D) + p["conv_b"]

    if cf != 1:
        k = grouped_conv(k)
        v = grouped_conv(v)
    k = jnp.concatenate([jnp.broadcast_to(p["null_k"], (B, 1, D)), k], axis=1)
    v = jnp.concatenate([jnp.broadcast_to(p["null_v"], (B, 1, D)), v], axis=1)

    def split_heads(z):
        return jnp.transpose(z.reshape(B, z.shape[1], heads, Dh), (0, 2, 1, 3))

    qh, kh, vh = split_heads(q), split_heads(k), split_heads(v)
    dots = jnp.einsum("bhid,bhjd->bhij", qh, kh) * (float(D) ** -0.5)
    pos_k = jnp.arange(T)
    if padding < cf:
        pos_k = jnp.pad(pos_k, (padding, 0))
    blk_max = pos_k.reshape(-1, cf).max(axis=-1)
    mask = jnp.arange(T)[:, None] < blk_max[None, :]
    mask = jnp.pad(mask, ((0, 0), (1, 0)), constant_values=False)
    dots = jnp.where(mask[None, None], -jnp.inf, dots)
    attn = jax.nn.softmax(dots, axis=-1)
    out = jnp.einsum("bhij,bhjd->bhid", attn, vh)
    out1 = jnp.transpose(out, (0, 2, 1, 3)).reshape(B, T, D) @ p["w_out"] + p["b_out"]

    def ln(z):
        mean = z.mean(-1, keepdims=True)
        std = jnp.std(z, axis=-1, keepdims=True, ddof=1)
        return p["ln_g"] * (z - mean) / (std + eps) + p["ln_b"]

    out2 = ln(out1 + x)
    out3 = jnp.maximum(out2 @ p["ff_w1"] + p["ff_b1"], 0.0) @ p["ff_w2"] + p["ff_b2"]
    return ln(out2 + out3)


if __name__ == "__main__":
    key = jax.random.PRNGKey(0)
    keys = jax.random.split(key, 14)

    # decoder_only_module(input_dim=32, compress_factor=3, num_heads=4, dropout_prob=0.0)
    B, T, D = 2, 10, 32
    heads, cf = 4, 3
    Dg = D // heads

    def u(k, shape, scale):
        return jax.random.uniform(k, shape, jnp.float32, -scale, scale)

    params = {
        "w_qkv": u(keys[0], (D, 3 * D), 1.0 / math.sqrt(D)),
        "conv_w": u(keys[1], (D, Dg, cf), 1.0 / math.sqrt(Dg * cf)),   # Conv1d(groups=heads)
        "conv_b": u(keys[2], (D,), 1.0 / math.sqrt(Dg * cf)),
        "null_k": u(keys[3], (1, 1, D), 0.02),
        "null_v": u(keys[4], (1, 1, D), 0.02),
        "w_out": u(keys[5], (D, D), 1.0 / math.sqrt(D)),
        "b_out": u(keys[6], (D,), 1.0 / math.sqrt(D)),
        "ln_g": 1.0 + u(keys[7], (D,), 0.1),
        "ln_b": u(keys[8], (D,), 0.1),
        "ff_w1": u(keys[9], (D, D), 1.0 / math.sqrt(D)),
        "ff_b1": u(keys[10], (D,), 1.0 / math.sqrt(D)),
        "ff_w2": u(keys[11], (D, D), 1.0 / math.sqrt(D)),
        "ff_b2": u(keys[12], (D,), 1.0 / math.sqrt(D)),
    }
    x = jax.random.normal(keys[13], (B, T, D), dtype=jnp.float32)

    out = decoder_only_forward(x, params, heads, cf)
    out = jax.block_until_ready(out)
    ref = _reference_forward(x, params, heads, cf)

    assert out.shape == (B, T, D)
    assert bool(jnp.all(jnp.isfinite(out)))
    assert jnp.allclose(out, ref, atol=2e-4, rtol=2e-4), float(jnp.max(jnp.abs(out - ref)))

    print("KERNEL_OK")
</pallas_src>

<mosaic_0001>
module attributes {stable_mosaic.version = 11 : i64} {
  func.func @_qkv_kernel(%arg0: i32, %arg1: memref<16x128xf32, #tpu.memory_space<vmem>>, %arg2: memref<128x128xf32, #tpu.memory_space<vmem>>, %arg3: memref<16x32xf32, #tpu.memory_space<vmem>>, %arg4: memref<16x32xf32, #tpu.memory_space<vmem>>, %arg5: memref<16x32xf32, #tpu.memory_space<vmem>>) attributes {dimension_semantics = [#tpu.dimension_semantics<parallel>], iteration_bounds = array<i64: 2>, scalar_prefetch = 0 : i64, scratch_operands = 0 : i64, tpu.core_type = #tpu.core_type<tc>, window_params = [{transform_indices = @transform_0, window_bounds = array<i64: 16, 128>}, {pipeline_mode = #tpu.pipeline_mode<synchronous>, transform_indices = @transform_1, window_bounds = array<i64: 128, 128>}, {transform_indices = @transform_2, window_bounds = array<i64: 16, 32>}, {transform_indices = @transform_3, window_bounds = array<i64: 16, 32>}, {transform_indices = @transform_4, window_bounds = array<i64: 16, 32>}]} {
    %c0 = arith.constant 0 : index
    %c0_0 = arith.constant 0 : index
    %0 = vector.load %arg1[%c0, %c0_0] : memref<16x128xf32, #tpu.memory_space<vmem>>, vector<16x128xf32>
    %c0_1 = arith.constant 0 : index
    %c0_2 = arith.constant 0 : index
    %1 = vector.load %arg2[%c0_1, %c0_2] : memref<128x128xf32, #tpu.memory_space<vmem>>, vector<128x128xf32>
    %cst = arith.constant dense<0.000000e+00> : vector<16x128xf32>
    %2 = tpu.matmul %0, %1, %cst {dimension_numbers = #tpu.dot_dimension_numbers<[1], [0], [0], [1], [0, 0, 1, 1], [], []>} : vector<16x128xf32>, vector<128x128xf32>, vector<16x128xf32> -> vector<16x128xf32>
    %3 = vector.extract_strided_slice %2 {offsets = [0, 0], sizes = [16, 32], strides = [1, 1]} : vector<16x128xf32> to vector<16x32xf32>
    %c0_3 = arith.constant 0 : index
    %c0_4 = arith.constant 0 : index
    %4 = vector.load %arg3[%c0_3, %c0_4] : memref<16x32xf32, #tpu.memory_space<vmem>>, vector<16x32xf32>
    tpu.vector_store %arg3[%c0_3, %c0_4], %3 {strides = array<i32>} : memref<16x32xf32, #tpu.memory_space<vmem>>, vector<16x32xf32>,
    %5 = vector.extract_strided_slice %2 {offsets = [0, 32], sizes = [16, 32], strides = [1, 1]} : vector<16x128xf32> to vector<16x32xf32>
    %c0_5 = arith.constant 0 : index
    %c0_6 = arith.constant 0 : index
    %6 = vector.load %arg4[%c0_5, %c0_6] : memref<16x32xf32, #tpu.memory_space<vmem>>, vector<16x32xf32>
    tpu.vector_store %arg4[%c0_5, %c0_6], %5 {strides = array<i32>} : memref<16x32xf32, #tpu.memory_space<vmem>>, vector<16x32xf32>,
    %7 = vector.extract_strided_slice %2 {offsets = [0, 64], sizes = [16, 32], strides = [1, 1]} : vector<16x128xf32> to vector<16x32xf32>
    %c0_7 = arith.constant 0 : index
    %c0_8 = arith.constant 0 : index
    %8 = vector.load %arg5[%c0_7, %c0_8] : memref<16x32xf32, #tpu.memory_space<vmem>>, vector<16x32xf32>
    tpu.vector_store %arg5[%c0_7, %c0_8], %7 {strides = array<i32>} : memref<16x32xf32, #tpu.memory_space<vmem>>, vector<16x32xf32>,
    return
  }
  func.func @transform_0(%arg0: i32) -> (i32, i32) {
    %c0_i32 = arith.constant 0 : i32
    %c0_i32_0 = arith.constant 0 : i32
    return %arg0, %c0_i32 : i32, i32
  }
  func.func @transform_1(%arg0: i32) -> (i32, i32) {
    %c0_i32 = arith.constant 0 : i32
    %c0_i32_0 = arith.constant 0 : i32
    %c0_i32_1 = arith.constant 0 : i32
    return %c0_i32, %c0_i32_0 : i32, i32
  }
  func.func @transform_2(%arg0: i32) -> (i32, i32) {
    %c0_i32 = arith.constant 0 : i32
    %c0_i32_0 = arith.constant 0 : i32
    return %arg0, %c0_i32 : i32, i32
  }
  func.func @transform_3(%arg0: i32) -> (i32, i32) {
    %c0_i32 = arith.constant 0 : i32
    %c0_i32_0 = arith.constant 0 : i32
    return %arg0, %c0_i32 : i32, i32
  }
  func.func @transform_4(%arg0: i32) -> (i32, i32) {
    %c0_i32 = arith.constant 0 : i32
    %c0_i32_0 = arith.constant 0 : i32
    return %arg0, %c0_i32 : i32, i32
  }
}

</mosaic_0001>

<bundles_post_ra>
// kernel: tpu_custom_call.1
= control target key start
LH: loop header
LB: loop body
LE: loop exit
PB: predicated region body
PF: predicated region fallthrough
CT: control target
= control target key end

     0   :  { %10 = vsyncpa [#allocation3], 0  ;;  %s1285_s0 = inlined_call_operand.hbm [shape: f32[32,128], index: 0, kind: input, shape index: {}]   ;;  %s1286_s1 = inlined_call_operand.hbm [shape: f32[128,128], index: 1, kind: input, shape index: {}]   ;;  %s1287_s2 = inlined_call_operand.hbm [shape: f32[32,32], index: 2, kind: output, shape index: {0}]   ;;  %s1288_s3 = inlined_call_operand.hbm [shape: f32[32,32], index: 3, kind: output, shape index: {1}]   ;;  %s1289_s4 = inlined_call_operand.hbm [shape: f32[32,32], index: 4, kind: output, shape index: {2}]  }
   0x1   :  { %12 = vsyncpa [#allocation3 + $0x1], 0 }
   0x2   :  { %13 = vsyncpa [#allocation6], 0 }
   0x3   :  { %14 = vsyncpa [#allocation4], 0 }
   0x4   :  { %16 = vsyncpa [#allocation4 + $0x1], 0 }
   0x5   :  { %17 = vsyncpa [#allocation9], 0 }
   0x6   :  { %19 = vsyncpa [#allocation9 + $0x1], 0  ;;  %s979_s15 = smov 0   ;;  %s981_s16 = smov 0  }
   0x7   :  { %s983_s17 = smov 0   ;;  %s985_s18 = smov 0  }
   0x8 LB: > { %s1000_s19 = sadd.s32 4294967295, %s941_s18   ;;  %s567_s20 = sadd.s32 4294967294, %s941_s18   ;;  %s941_s18 = sphi %s985_s18, %s1309_s18   ;;  %s937_s17 = sphi %s983_s17, %s1308_s17   ;;  %s933_s16 = sphi %s981_s16, %s1307_s16   ;;  %s929_s15 = sphi %s979_s15, %s1306_s15  }
   0x9   : > { %p45_p0 = scmp.ne.s32.totalorder %s933_s16, %s929_s15  ;;  %p1290_p1 = scmp.eq.s32.totalorder %s1000_s19, 0 }
   0xa   : > { %p96_p3 = scmp.eq.s32.totalorder %s567_s20, 1  ;;  %p568_p5 = scmp.ge.s32.totalorder %s941_s18, 1 }
   0xb   : > { %p1011_p4 = por %p1290_p1, %p45_p0  ;;  %p155_p7 = scmp.lt.s32.totalorder %s941_s18, 3 }
   0xc   : > { %p1016_p6 = por %p96_p3, %p45_p0  ;;  %s943_s24 = smov [#allocation5]  }
   0xd   : > { %s1293_s21 = scalar_select %p1011_p4, 1, 0 }
   0xe   : > { %s1294_s22 = scalar_select %p1016_p6, 1, 0 }
   0xf   : > { %p1021_p8 = pnand %p568_p5, %p155_p7  ;;  %s167_s25 = sshll.u32 %s943_s24, 4  ;;  %s1025_s25 = int_to_ptr.vmem [resolvable:$true] %s167_s25 }
  0x10   : > { %s1037_s27 = sadd.s32 1, %s941_s18   ;;  %s32_s28 = sadd.s32 1, %s937_s17 }
  0x11   : > { %s1295_s23 = scalar_select %p1021_p8, 1, 0 }
  0x12   : > { %p692_p9 = pneg %p1021_p8  ;;  %s29_s29 = ssub.s32 %s941_s18, %s1037_s27 }
  0x13   : > { %s753_s6 = scalar_lea.hbm %s1286_s1, 2048 }
  0x14   : > { %p1032_p11 = pnand %p692_p9, %p1290_p1  ;;  %p754_p12 = scmp.ne.s32.totalorder %s1286_s1, %s753_s6 }
  0x15   : > { %p760_p5 = scmp.lt.u32.totalorder %s753_s6, %s1286_s1 }
  0x16   : > { %p755_p13 = pneg %p1032_p11 }
  0x18   : > { %p756_p0 = pnand %p755_p13, %p754_p12 }
  0x1a   : > { %p757_p3 = pneg %p756_p0 }
  0x1c   : > { %p762_p7 = pnand %p760_p5, %p757_p3 }
  0x1e   : > { %765 = shalt.err (!%p762_p7)
}
  0x1f   : > { %s766_s11 = scalar_lea.vmem %s1025_s25, 2048  ;;  %p774_p2 = scmp.lt.s32.totalorder %s1025_s25, %s1025_s25 }
  0x20   : > { %p767_p9 = scmp.ne.s32.totalorder %s1025_s25, %s766_s11  ;;  %p775_p6 = scmp.lt.s32.totalorder %s766_s11, %s766_s11 }
  0x22   : > { %p769_p10 = pnand %p767_p9, %p755_p13  ;;  %p776_p4 = por %p775_p6, %p774_p2 }
  0x24   : > { %p770_p1 = pneg %p769_p10 }
  0x26   : > { %p777_p8 = pnand %p776_p4, %p770_p1 }
  0x28   : > { %780 = shalt.err (!%p777_p8)
}
  0x29   : > { %s944_s12 = smov 128   ;;  %s945_s13 = smov 8  }
  0x2a   : > { %695 = dma.hbm_to_vmem [thread:$0]  (!%p1032_p11), %s1286_s1, 2048, %s1025_s25, [#allocation6], %s944_s12, %s944_s12, %s945_s13  }
  0x2b   : > { %p30_p1 = scmp.eq.s32.totalorder %s29_s29, 0  ;;  %p39_p2 = scmp.ne.s32.totalorder %s937_s17, %s933_s16 }
  0x2c   : > { %p40_p4 = scmp.eq.s32.totalorder %s941_s18, 0  ;;  %p711_p6 = scmp.lt.s32.totalorder %s941_s18, 2 }
  0x2d   : > { %s1071_s30 = scalar_select %p30_p1, %s937_s17, %s32_s28  }
  0x2e   : > { %p41_p8 = por %p40_p4, %p39_p2  ;;  %p1297_p10 = scmp.eq.s32.totalorder %s1000_s19, 1 }
  0x2f   : > { %s181_s26 = sand.u32 1, %s937_s17   ;;  %s591_s6 = sshll.u32 %s941_s18, 8 }
  0x30   : > { %p1075_p12 = por %p1297_p10, %p39_p2  ;;  %s571_s7 = sshll.u32 %s181_s26, 4 }
  0x31   : > { %s1084_s10 = scalar_lea.hbm %s1285_s0, %s591_s6  ;;  %s185_s25 = scalar_lea.vmem [#allocation2], %s571_s7 }
  0x32   : > { %s192_s28 = sshll.u32 %s185_s25, 4  ;;  %p1086_p11 = pnand %p711_p6, %p41_p8  ;;  %s1090_s28 = int_to_ptr.vmem [resolvable:$true] %s192_s28 }
  0x33   : > { %s1092_s11 = scalar_lea.sflag [#allocation3], %s181_s26  ;;  %s781_s14 = scalar_lea.hbm %s1084_s10, 256 }
  0x34   : > { %p782_p13 = scmp.ne.s32.totalorder %s1084_s10, %s781_s14  ;;  %p783_p0 = pneg %p1086_p11 }
  0x35   : > { %s786_s7 = scalar_lea.hbm %s1285_s0, 512  ;;  %p787_p7 = scmp.lt.u32.totalorder %s1084_s10, %s1285_s0 }
  0x36   : > { %p784_p3 = pnand %p783_p0, %p782_p13  ;;  %p788_p9 = scmp.lt.u32.totalorder %s786_s7, %s781_s14 }
  0x37   : > { %p790_p2 = scmp.lt.u32.totalorder %s781_s14, %s1084_s10 }
  0x38   : > { %p785_p5 = pneg %p784_p3  ;;  %p789_p1 = por %p788_p9, %p787_p7 }
  0x3a   : > { %p791_p4 = por %p790_p2, %p789_p1 }
  0x3c   : > { %p792_p6 = pnand %p791_p4, %p785_p5 }
  0x3e   : > { %795 = shalt.err (!%p792_p6)
}
  0x3f   : > { %s796_s26 = scalar_lea.vmem %s1090_s28, 256  ;;  %s946_s25 = smov [#allocation2]  }
  0x40   : > { %p797_p8 = scmp.ne.s32.totalorder %s1090_s28, %s796_s26  ;;  %s801_s24 = sshll.u32 %s946_s25, 4  ;;  %s802_s24 = int_to_ptr.vmem [resolvable:$false] %s801_s24 }
  0x41   : > { %s803_s6 = scalar_lea.vmem %s802_s24, 512  ;;  %p804_p3 = scmp.lt.s32.totalorder %s1090_s28, %s802_s24 }
  0x42   : > { %p799_p10 = pnand %p797_p8, %p783_p0  ;;  %p805_p7 = scmp.lt.s32.totalorder %s803_s6, %s796_s26 }
  0x44   : > { %p800_p13 = pneg %p799_p10  ;;  %p806_p9 = por %p805_p7, %p804_p3 }
  0x46   : > { %p807_p1 = pnand %p806_p9, %p800_p13 }
  0x48   : > { %810 = shalt.err (!%p807_p1)
}
  0x49   : > { %699 = dma.hbm_to_vmem [thread:$0]  (!%p1086_p11), %s1084_s10, 256, %s1090_s28, %s1092_s11, %s944_s12, %s944_s12, %s945_s13  }
  0x4a   : > { %p1300_p0 = scmp.ne.s32.totalorder %s1295_s23, 0 }
  0x4b   : > { %s1126_s14 = sand.u32 (!%p1300_p0), 1, %s933_s16   ;;  %p1301_p5 = scmp.ne.s32.totalorder (!%p1300_p0), %s1293_s21, 0 }
  0x4c   : > { %204 = sbr.rel (%p1300_p0) target bundleno = 499 (0x1f3), region = 28  ;;  %s1129_s7 = sshll.u32 (!%p1300_p0), %s1126_s14, 4 }
  0x4d   : > { %s207_s29 = scalar_lea.sflag (!%p1300_p0), [#allocation3], %s1126_s14  ;;  %s210_s8 = scalar_lea.vmem (!%p1300_p0), [#allocation2], %s1129_s7 }
  0x53   : > { %912 = dma.done.wait (%p1301_p5), %s207_s29, 256  }
  0x54   : > { %914 = vsyncadd (%p1301_p5), %s207_s29, 4294967040  ;;  %p1302_p11 = scmp.eq.s32.totalorder %s1000_s19, 0 }
  0x56   : > { %916 = dma.done.wait (%p1302_p11), [#allocation6], 2048   ;;  %p1303_p2 = pmov %p1302_p11 }
  0x57   : > { %v255_v0 = vld [vmem:[#allocation5] sm:$0xff]  ;;  %v256_v1 = vld [vmem:[#allocation5 + $0x8] sm:$0xff]  ;;  %v257_v2 = vld [vmem:[#allocation5 + $0x10] sm:$0xff]  ;;  %s234_s21 = scalar_lea.vmem [#allocation7], %s1129_s7  ;;  %s1147_s12 = sshll.u32 %s1000_s19, 8  ;;  %vm346_vm0 = vcmask 261120  }
  0x58   : > { %918 = vsyncadd (%p1303_p2), [#allocation6], 4294965248  ;;  %v648_v3 = vpack.c.bf16 %v256_v1, %v255_v0  ;;  %v258_v4 = vld [vmem:[#allocation5 + $0x18] sm:$0xff]  ;;  %v259_v6 = vld [vmem:[#allocation5 + $0x20] sm:$0xff]  ;;  %s391_s23 = sshll.u32 %s234_s21, 4  ;;  %s1155_s28 = scalar_lea.hbm %s1287_s2, %s1147_s12  ;;  %s1149_s23 = int_to_ptr.vmem [resolvable:$true] %s391_s23 }
  0x59   : > { %v652_v5 = vpack.c.bf16 %v258_v4, %v257_v2  ;;  %v260_v7 = vld [vmem:[#allocation5 + $0x28] sm:$0xff]  ;;  %v253_v9 = vld [vmem:[%s210_s8] sm:$0xff]  ;;  %v262_v11 = vld [vmem:[#allocation5 + $0x38] sm:$0xff]  ;;  %s947_s11 = smov 64   ;;  %s948_s9 = smov 96  }
  0x5a   : > { %649 = vmatprep.subr.bf16.mxu0 %v648_v3  ;;  %v656_v8 = vpack.c.bf16 %v260_v7, %v259_v6  ;;  %v261_v10 = vld [vmem:[#allocation5 + $0x30] sm:$0xff]  ;;  %645 = vmatprep.mubr.f32.mxu0 %v253_v9  ;;  %v263_v13 = vld [vmem:[#allocation5 + $0x40] sm:$0xff]  ;;  %v264_v14 = vld [vmem:[#allocation5 + $0x48] sm:$0xff]  ;;  %s368_s26 = scalar_lea.sflag [#allocation4], %s1126_s14  ;;  %s811_s25 = scalar_lea.vmem %s1149_s23, 256 }
  0x5b   : > { %651 = vmatpush3.bf16.msra.mxu0 %v648_v3  ;;  %v660_v12 = vpack.c.bf16 %v262_v11, %v261_v10  ;;  %v664_v15 = vpack.c.bf16 %v264_v14, %v263_v13  ;;  %v265_v16 = vld [vmem:[#allocation5 + $0x50] sm:$0xff]  ;;  %v266_v17 = vld [vmem:[#allocation5 + $0x58] sm:$0xff]  ;;  %v267_v19 = vld [vmem:[#allocation5 + $0x60] sm:$0xff]  ;;  %p812_p4 = scmp.ne.s32.totalorder %s1149_s23, %s811_s25  ;;  %s949_s24 = smov [#allocation7]  }
  0x5c   : > { %653 = vmatprep.subr.bf16.mxu0 %v652_v5  ;;  %v668_v18 = vpack.c.bf16 %v266_v17, %v265_v16  ;;  %v268_v20 = vld [vmem:[#allocation5 + $0x68] sm:$0xff]  ;;  %v269_v22 = vld [vmem:[#allocation5 + $0x70] sm:$0xff]  ;;  %v270_v23 = vld [vmem:[#allocation5 + $0x78] sm:$0xff]  ;;  %s815_s6 = sshll.u32 %s949_s24, 4  ;;  %s816_s6 = int_to_ptr.vmem [resolvable:$false] %s815_s6 }
  0x5d   : > { %v672_v21 = vpack.c.bf16 %v268_v20, %v267_v19  ;;  %v676_v24 = vpack.c.bf16 %v270_v23, %v269_v22  ;;  %v254_v25 = vld [vmem:[%s210_s8 + $0x8] sm:$0xff]  ;;  %p813_p6 = pnand %p812_p4, %p1075_p12  ;;  %s817_s29 = scalar_lea.vmem %s816_s6, 512 }
  0x5e   : > { %p818_p10 = scmp.lt.s32.totalorder %s1149_s23, %s816_s6  ;;  %p819_p13 = scmp.lt.s32.totalorder %s817_s29, %s811_s25 }
  0x5f   : > { %655 = vmatpush3.bf16.msra.mxu0 %v652_v5  ;;  %p814_p8 = pneg %p813_p6 }
  0x60   : > { %657 = vmatprep.subr.bf16.mxu0 %v656_v8  ;;  %p820_p3 = por %p819_p13, %p818_p10 }
  0x62   : > { %p821_p7 = pnand %p820_p3, %p814_p8 }
  0x63   : > { %659 = vmatpush3.bf16.msra.mxu0 %v656_v8 }
  0x64   : > { %661 = vmatprep.subr.bf16.mxu0 %v660_v12 }
  0x67   : > { %663 = vmatpush3.bf16.msra.mxu0 %v660_v12 }
  0x68   : > { %665 = vmatprep.subr.bf16.mxu0 %v664_v15 }
  0x6b   : > { %667 = vmatpush3.bf16.msra.mxu0 %v664_v15 }
  0x6c   : > { %669 = vmatprep.subr.bf16.mxu0 %v668_v18 }
  0x6f   : > { %671 = vmatpush3.bf16.msra.mxu0 %v668_v18 }
  0x70   : > { %673 = vmatprep.subr.bf16.mxu0 %v672_v21 }
  0x73   : > { %675 = vmatpush3.bf16.msra.mxu0 %v672_v21 }
  0x74   : > { %677 = vmatprep.subr.bf16.mxu0 %v676_v24 }
  0x77   : > { %679 = vmatpush3.bf16.msra.mxu0 %v676_v24 }
  0x7a   : > { %646 = vmatmul.mubr.f32.vlgmr.msra.gmra.mrb[0].mxu0 %v254_v25 }
 0x14d   : > { %v647_v26 = vpop.f32.mrb[0].mxu0 }
 0x14e   : > { %348 = vst.msk [vmem:[%s234_s21 + $0x8] sm:$0xff] %vm346_vm0, %v647_v26  ;;  %v337_v27 = vpop.f32.mrb[1].mxu0 }
 0x14f   : > { %347 = vst.msk [vmem:[%s234_s21] sm:$0xff] %vm346_vm0, %v337_v27  ;;  %359 = vrot.lane.b32.xlu1 %v337_v27, %s947_s11  ;;  %351 = vrot.lane.b32.xlu0 %v337_v27, %s948_s9 }
 0x150   : > { %824 = shalt.err (!%p821_p7)
}
 0x151   : > { %s825_s8 = scalar_lea.hbm %s1155_s28, 256  ;;  %s829_s10 = scalar_lea.hbm %s1287_s2, 512 }
 0x152   : > { %p826_p9 = scmp.ne.s32.totalorder %s1155_s28, %s825_s8  ;;  %p830_p5 = scmp.lt.u32.totalorder %s1155_s28, %s1287_s2 }
 0x153   : > { %p831_p11 = scmp.lt.u32.totalorder %s829_s10, %s825_s8  ;;  %p833_p4 = scmp.lt.u32.totalorder %s825_s8, %s1155_s28 }
 0x154   : > { %p827_p1 = pnand %p826_p9, %p1075_p12 }
 0x155   : > { %p832_p2 = por %p831_p11, %p830_p5 }
 0x156   : > { %p828_p0 = pneg %p827_p1 }
 0x157   : > { %p834_p6 = por %p833_p4, %p832_p2 }
 0x159   : > { %p835_p8 = pnand %p834_p6, %p828_p0 }
 0x15b   : > { %838 = shalt.err (!%p835_p8)
}
 0x15c   : > { %s950_s25 = smov 128   ;;  %s951_s29 = smov 8   ;;  %361 = vrot.lane.b32.xlu1 %v647_v26, %s947_s11  ;;  %353 = vrot.lane.b32.xlu0 %v647_v26, %s948_s9 }
 0x15d   : > { %686 = dma.vmem_to_hbm [thread:$0]  (%p1075_p12), %s1149_s23, 256, %s1155_s28, %s368_s26, %s950_s25, %s950_s25, %s951_s29  }
 0x15e   : > { %s241_s8 = scalar_lea.vmem [#allocation8], %s1129_s7  ;;  %s372_s13 = sand.u32 1, %s1000_s19  }
 0x15f   : > { %s407_s21 = sshll.u32 %s241_s8, 4  ;;  %s248_s10 = scalar_lea.vmem [#allocation10], %s1129_s7  ;;  %s1195_s21 = int_to_ptr.vmem [resolvable:$true] %s407_s21 }
 0x160   : > { %s423_s24 = sshll.u32 %s248_s10, 4  ;;  %s1201_s28 = scalar_lea.hbm %s1288_s3, %s1147_s12  ;;  %s1203_s24 = int_to_ptr.vmem [resolvable:$true] %s423_s24 }
 0x161   : > { %s1209_s11 = scalar_lea.hbm %s1289_s4, %s1147_s12  ;;  %s1213_s9 = scalar_lea.sflag [#allocation9], %s372_s13 }
 0x162   : > { %s839_s26 = scalar_lea.vmem %s1195_s21, 256  ;;  %s952_s6 = smov [#allocation8]  }
 0x163   : > { %p840_p10 = scmp.ne.s32.totalorder %s1195_s21, %s839_s26  ;;  %s843_s14 = sshll.u32 %s952_s6, 4  ;;  %s844_s14 = int_to_ptr.vmem [resolvable:$false] %s843_s14 }
 0x164   : > { %s845_s23 = scalar_lea.vmem %s844_s14, 512  ;;  %p846_p7 = scmp.lt.s32.totalorder %s1195_s21, %s844_s14 }
 0x165   : > { %p841_p13 = pnand %p840_p10, %p1075_p12  ;;  %p847_p9 = scmp.lt.s32.totalorder %s845_s23, %s839_s26 }
 0x167   : > { %p842_p3 = pneg %p841_p13  ;;  %p848_p1 = por %p847_p9, %p846_p7 }
 0x169   : > { %p849_p0 = pnand %p848_p1, %p842_p3 }
 0x1c1   : > { %v360_v28 = vpop.permute.xlu1 %359  ;;  %v352_v29 = vpop.permute.xlu0 %351 }
 0x1c2   : > { %365 = vst.msk [vmem:[%s248_s10] sm:$0xff] %vm346_vm0, %v360_v28  ;;  %357 = vst.msk [vmem:[%s241_s8] sm:$0xff] %vm346_vm0, %v352_v29 }
 0x1ce   : > { %v362_v30 = vpop.permute.xlu1 %361  ;;  %v354_v31 = vpop.permute.xlu0 %353 }
 0x1cf   : > { %366 = vst.msk [vmem:[%s248_s10 + $0x8] sm:$0xff] %vm346_vm0, %v362_v30  ;;  %358 = vst.msk [vmem:[%s241_s8 + $0x8] sm:$0xff] %vm346_vm0, %v354_v31 }
 0x1d0   : > { %852 = shalt.err (!%p849_p0)
}
 0x1d1   : > { %s853_s12 = scalar_lea.hbm %s1201_s28, 256  ;;  %s857_s10 = scalar_lea.hbm %s1288_s3, 512 }
 0x1d2   : > { %p854_p5 = scmp.ne.s32.totalorder %s1201_s28, %s853_s12  ;;  %p858_p4 = scmp.lt.u32.totalorder %s1201_s28, %s1288_s3 }
 0x1d3   : > { %p859_p6 = scmp.lt.u32.totalorder %s857_s10, %s853_s12  ;;  %p861_p10 = scmp.lt.u32.totalorder %s853_s12, %s1201_s28 }
 0x1d4   : > { %p855_p11 = pnand %p854_p5, %p1075_p12 }
 0x1d5   : > { %p860_p8 = por %p859_p6, %p858_p4 }
 0x1d6   : > { %p856_p2 = pneg %p855_p11 }
 0x1d7   : > { %p862_p13 = por %p861_p10, %p860_p8 }
 0x1d9   : > { %p863_p3 = pnand %p862_p13, %p856_p2 }
 0x1db   : > { %866 = shalt.err (!%p863_p3)
}
 0x1dc   : > { %687 = dma.vmem_to_hbm [thread:$0]  (%p1075_p12), %s1195_s21, 256, %s1201_s28, %s1213_s9, %s950_s25, %s950_s25, %s951_s29  }
 0x1dd   : > { %s867_s26 = scalar_lea.vmem %s1203_s24, 256  ;;  %s953_s6 = smov [#allocation10]  }
 0x1de   : > { %p868_p7 = scmp.ne.s32.totalorder %s1203_s24, %s867_s26  ;;  %s871_s14 = sshll.u32 %s953_s6, 4  ;;  %s872_s14 = int_to_ptr.vmem [resolvable:$false] %s871_s14 }
 0x1df   : > { %s873_s23 = scalar_lea.vmem %s872_s14, 512  ;;  %p874_p0 = scmp.lt.s32.totalorder %s1203_s24, %s872_s14 }
 0x1e0   : > { %p869_p9 = pnand %p868_p7, %p1075_p12  ;;  %p875_p5 = scmp.lt.s32.totalorder %s873_s23, %s867_s26 }
 0x1e2   : > { %p870_p1 = pneg %p869_p9  ;;  %p876_p11 = por %p875_p5, %p874_p0 }
 0x1e4   : > { %p877_p2 = pnand %p876_p11, %p870_p1 }
 0x1e6   : > { %880 = shalt.err (!%p877_p2)
}
 0x1e7   : > { %s881_s21 = scalar_lea.hbm %s1209_s11, 256  ;;  %s885_s8 = scalar_lea.hbm %s1289_s4, 512 }
 0x1e8   : > { %p882_p4 = scmp.ne.s32.totalorder %s1209_s11, %s881_s21  ;;  %p886_p10 = scmp.lt.u32.totalorder %s1209_s11, %s1289_s4 }
 0x1e9   : > { %p887_p13 = scmp.lt.u32.totalorder %s885_s8, %s881_s21  ;;  %p889_p7 = scmp.lt.u32.totalorder %s881_s21, %s1209_s11 }
 0x1ea   : > { %p883_p6 = pnand %p882_p4, %p1075_p12 }
 0x1eb   : > { %p888_p3 = por %p887_p13, %p886_p10 }
 0x1ec   : > { %p884_p8 = pneg %p883_p6 }
 0x1ed   : > { %p890_p9 = por %p889_p7, %p888_p3 }
 0x1ef   : > { %p891_p1 = pnand %p890_p9, %p884_p8 }
 0x1f1   : > { %894 = shalt.err (!%p891_p1)
}
 0x1f2   : > { %688 = dma.vmem_to_hbm [thread:$0]  (%p1075_p12), %s1203_s24, 256, %s1209_s11, %s1213_s9, %s950_s25, %s950_s25, %s951_s29  }
 0x1f3 PF: > { %s438_s19 = sand.u32 1, %s929_s15   ;;  %p1304_p0 = scmp.ne.s32.totalorder %s1294_s22, 0 }
 0x1f4   : > { %p1305_p5 = scmp.ge.s32.totalorder %s941_s18, 2  ;;  %s439_s7 = scalar_lea.sflag [#allocation4], %s438_s19 }
 0x1f6   : > { %p701_p11 = pnand %p1305_p5, %p1304_p0 }
 0x1f8   : > { %920 = dma.done.wait (!%p701_p11), %s439_s7, 256  }
 0x1f9   : > { %922 = vsyncadd (!%p701_p11), %s439_s7, 4294967040  ;;  %s447_s5 = sand.u32 1, %s567_s20  }
 0x1fa   : > { %s448_s26 = scalar_lea.sflag [#allocation9], %s447_s5 }
 0x1fb   : > { %924 = dma.done.wait (!%p701_p11), %s448_s26, 512  }
 0x1fc   : > { %926 = vsyncadd (!%p701_p11), %s448_s26, 4294966784  ;;  %p22_p12 = scmp.ge.s32.totalorder %s1037_s27, 4   ;;  %s1306_s15 = smov %s933_s16 }
 0x1fd   : > { %s1307_s16 = smov %s937_s17  ;;  %s1308_s17 = smov %s1071_s30 }
 0x1fe   : > { %s1309_s18 = smov %s1037_s27  ;;  %24 = sbr.rel (!%p22_p12) target bundleno = 8 (0x8), region = 109 }
 0x205   :  { %462 = vsyncpa [#allocation3], 1 }
 0x206   :  { %464 = vsyncpa [#allocation3 + $0x1], 1 }
 0x207   :  { %465 = vsyncpa [#allocation6], 1 }
 0x208   :  { %466 = vsyncpa [#allocation4], 1 }
 0x209   :  { %468 = vsyncpa [#allocation4 + $0x1], 1 }
 0x20a   :  { %469 = vsyncpa [#allocation9], 1 }
 0x20b   :  { %471 = vsyncpa [#allocation9 + $0x1], 1 }

</bundles_post_ra>
